<compile_context>
chip_gen: v6e
topology: v6e:2x2x1
jax: 0.10.0
libtpu: 0.0.40
codegen_flags: <defaults>
</compile_context>

<pallas_src>
import functools

import jax
import jax.numpy as jnp
from jax.experimental import pallas as pl
from jax.experimental.pallas import tpu as pltpu

LN_EPS = 1e-5  # PyTorch nn.LayerNorm default


def _round_up(x, m):
    return (x + m - 1) // m * m


# --------------------------------------------------------------------------- #
# Kernel
# --------------------------------------------------------------------------- #
def _adapter_kernel(lang_ref,              # scalar-prefetch (SMEM): [1] int32
                    x_ref,                 # (TM, Dp)   input rows
                    gamma_ref, beta_ref,   # (1, Dp)    LayerNorm affine (selected lang)
                    w1_ref, b1_ref,        # (Dp, Hp), (1, Hp)
                    w2_ref, b2_ref,        # (Hp, Dp), (1, Dp)
                    o_ref,                 # (TM, Dp)   output rows
                    *, d_valid):
    del lang_ref  # only used by the index_maps to pick the language block
    x = x_ref[...].astype(jnp.float32)

    # Two-pass LayerNorm over the true model width D (not the padded width).
    # The wrapper zero-pads the extra lanes, so the mean sum is already exact;
    # the deviations are masked so padded lanes contribute nothing to the
    # variance either (two-pass avoids the E[x^2]-E[x]^2 cancellation).
    inv_d = 1.0 / d_valid
    lane = jax.lax.broadcasted_iota(jnp.int32, (1, x.shape[-1]), 1)
    lane_mask = lane < d_valid
    mean = jnp.sum(x, axis=-1, keepdims=True) * inv_d
    dev = jnp.where(lane_mask, x - mean, 0.0)
    var = jnp.sum(dev * dev, axis=-1, keepdims=True) * inv_d
    # NB: fully-padded rows have var == 0 -> rsqrt(eps) is finite; they feed
    # the GEMMs as harmless wasted work and are sliced off by the wrapper.
    xn = dev * jax.lax.rsqrt(var + LN_EPS)
    # gamma/beta are zero in padded lanes -> h is exactly 0 there.
    h = xn * gamma_ref[...] + beta_ref[...]

    # FeedForward: Linear -> ReLU -> Linear (dropout = 0 in eval / p=0.0).
    # Cast activations to the weight dtype (bf16 weights -> native MXU path),
    # accumulate in f32.
    # TODO(synk): optional fp8 (float8_e4m3) weight path for v7x (bf16 x fp8).
    w1 = w1_ref[...]
    h1 = jnp.dot(h.astype(w1.dtype), w1,
                 preferred_element_type=jnp.float32) + b1_ref[...]
    h1 = jnp.maximum(h1, 0.0)
    w2 = w2_ref[...]
    ff = jnp.dot(h1.astype(w2.dtype), w2,
                 preferred_element_type=jnp.float32) + b2_ref[...]

    # Residual with the *original* input (padded rows/lanes are sliced away by
    # the wrapper).
    o_ref[...] = (x + ff).astype(o_ref.dtype)


# --------------------------------------------------------------------------- #
# Generation-aware planning
# --------------------------------------------------------------------------- #
def _hardware():
    """(vmem_capacity_bytes, tensorcores_per_chip, is_v7x) with safe fallbacks."""
    kind = ""
    try:
        kind = jax.devices()[0].device_kind.lower()
    except Exception:
        pass
    is_v7 = "v7" in kind
    vmem_cap = (64 << 20) if is_v7 else (128 << 20)
    try:
        vmem_cap = int(pltpu.get_tpu_info().vmem_capacity_bytes)
    except Exception:
        pass
    n_cores = 2 if is_v7 else 1
    return vmem_cap, n_cores, is_v7


def _plan(rows, d_pad, h_pad, x_bytes, w_bytes):
    """Pick row tile, x buffer depth, dimension semantics and VMEM limit."""
    vmem_cap, n_cores, is_v7 = _hardware()
    budget = int(0.58 * vmem_cap)          # ~74 MiB on v5e/v6e, ~37 MiB on v7x

    sub = 8 * (4 // x_bytes)               # min sublane tile: 8 f32 / 16 bf16
    rows_s = _round_up(rows, sub)

    # Resident bytes that do not scale with tm: single-buffered weights.
    weight_bytes = 2 * d_pad * h_pad * w_bytes + (4 * d_pad + 2 * h_pad) * 4

    def per_row(x_bufs):
        io = (x_bufs + 2) * d_pad * x_bytes            # x (x_bufs) + out (2 bufs)
        interm = 3 * d_pad * 4 + h_pad * 4             # x_f32 / xn / ff + h1, f32
        return io + interm

    x_bufs = 3 if is_v7 else 2             # extra input buffer only on v7x
    tm_cap = (budget - weight_bytes) // per_row(x_bufs) // sub * sub
    if tm_cap < sub and x_bufs == 3:       # drop the third buffer before tm
        x_bufs = 2
        tm_cap = (budget - weight_bytes) // per_row(x_bufs) // sub * sub
    tm_cap = max(sub, tm_cap)
    tm = int(min(2048, rows_s, tm_cap))

    # Multi-TensorCore chips (v7x): split the row axis so every core gets work,
    # but keep tm >= 256 when the input is large (MXU M-dim amortization).
    if n_cores > 1 and rows_s >= 2 * sub:
        per_core = _round_up(pl.cdiv(rows_s, n_cores), sub)
        floor = 256 if rows_s >= 256 * n_cores else sub
        tm = int(min(tm, max(per_core, floor)))

    rows_pad = _round_up(rows_s, tm)
    grid = rows_pad // tm

    vmem_need = weight_bytes + tm * per_row(x_bufs)
    vmem_limit = int(min(max(int(1.5 * vmem_need), 32 << 20),
                         int(0.9 * vmem_cap)))

    if n_cores > 1 and grid > 1:
        dim_sem = (getattr(pltpu, "CORE_PARALLEL", "parallel"),)
    else:
        dim_sem = ("parallel",)
    return tm, rows_pad, x_bufs, dim_sem, vmem_limit


def _pad_params(params, d_pad, h_pad):
    """Zero-pad the model/hidden axes of the stacked per-language params."""
    D = params["gamma"].shape[-1]
    H = params["b1"].shape[-1]
    pd, ph = d_pad - D, h_pad - H
    if pd == 0 and ph == 0:
        return params
    return dict(
        gamma=jnp.pad(params["gamma"], ((0, 0), (0, 0), (0, pd))),
        beta=jnp.pad(params["beta"], ((0, 0), (0, 0), (0, pd))),
        w1=jnp.pad(params["w1"], ((0, 0), (0, pd), (0, ph))),
        b1=jnp.pad(params["b1"], ((0, 0), (0, 0), (0, ph))),
        w2=jnp.pad(params["w2"], ((0, 0), (0, ph), (0, pd))),
        b2=jnp.pad(params["b2"], ((0, 0), (0, 0), (0, pd))),
    )


# --------------------------------------------------------------------------- #
# Wrapper
# --------------------------------------------------------------------------- #
def multilingual_adapter(x_tbn, lang, params):
    """x_tbn: (T, B, N) array. lang: (1,) int32 array. params: dict of stacked
    per-language parameters (leading axis = n_languages)."""
    T, B, D = x_tbn.shape
    H = params["w1"].shape[-1]
    d_pad = _round_up(D, 128)
    h_pad = _round_up(H, 128)
    rows = T * B

    x_bytes = x_tbn.dtype.itemsize
    w_bytes = params["w1"].dtype.itemsize
    tm, rows_pad, x_bufs, dim_sem, vmem_limit = _plan(
        rows, d_pad, h_pad, x_bytes, w_bytes)
    grid = (rows_pad // tm,)

    # Lane-dense 2-D slab: flatten to (rows, D) with the model axis last, pad
    # D (and H) to multiples of 128 (unmasked stores, filled MXU contraction),
    # pad rows up to the tile.  Padding only materializes when the shape is
    # unaligned (production shapes with D % 128 == 0 and aligned rows skip it).
    # TODO(synk): for unaligned production shapes, fuse the pad/slice into the
    # pallas_call (allow_input_fusion) or handle the ragged last tile in-kernel
    # with a masked store -- the extra HBM pass dominates when it triggers.
    x2d = x_tbn.reshape(rows, D)
    if rows_pad != rows or d_pad != D:
        x2d = jnp.pad(x2d, ((0, rows_pad - rows), (0, d_pad - D)))
    p = _pad_params(params, d_pad, h_pad)

    def lang_map(i, lang_ref):
        return (lang_ref[0], 0, 0)

    def row_map(i, lang_ref):
        return (i, 0)

    # Per-language parameters: leading axis squeezed; block index comes from
    # the scalar-prefetched language id.  Buffered(1): the block index is
    # constant across the grid so a single VMEM buffer suffices and the
    # weights are DMA'd once (not re-fetched per grid step).
    def param_spec(shape):
        return pl.BlockSpec(shape, lang_map, pipeline_mode=pl.Buffered(1))

    if x_bufs == 2:
        x_spec = pl.BlockSpec((tm, d_pad), row_map)
    else:
        x_spec = pl.BlockSpec((tm, d_pad), row_map,
                              pipeline_mode=pl.Buffered(x_bufs))

    grid_spec = pltpu.PrefetchScalarGridSpec(
        num_scalar_prefetch=1,
        grid=grid,
        in_specs=[
            x_spec,                                   # x
            param_spec((None, 1, d_pad)),             # gamma
            param_spec((None, 1, d_pad)),             # beta
            param_spec((None, d_pad, h_pad)),         # w1
            param_spec((None, 1, h_pad)),             # b1
            param_spec((None, h_pad, d_pad)),         # w2
            param_spec((None, 1, d_pad)),             # b2
        ],
        out_specs=pl.BlockSpec((tm, d_pad), row_map),
    )

    weight_bytes = 2 * d_pad * h_pad * w_bytes + (4 * d_pad + 2 * h_pad) * 4
    cost = pl.CostEstimate(
        flops=4 * rows_pad * d_pad * h_pad,
        transcendentals=rows_pad,
        bytes_accessed=2 * rows_pad * d_pad * x_bytes + weight_bytes,
    )

    out2d = pl.pallas_call(
        functools.partial(_adapter_kernel, d_valid=D),
        out_shape=jax.ShapeDtypeStruct((rows_pad, d_pad), x_tbn.dtype),
        grid_spec=grid_spec,
        compiler_params=pltpu.CompilerParams(
            dimension_semantics=dim_sem,
            vmem_limit_bytes=vmem_limit),
        cost_estimate=cost,
    )(lang.astype(jnp.int32), x2d,
      p["gamma"], p["beta"], p["w1"], p["b1"], p["w2"], p["b2"])

    return out2d[:rows, :D].reshape(T, B, D)


# --------------------------------------------------------------------------- #
# Reference + test harness
# --------------------------------------------------------------------------- #
def init_params(key, n_languages, model_size, bottleneck_size):
    """Deterministic synthetic parameters (stacked over the language axis)."""
    ks = jax.random.split(key, 4)
    gamma = jnp.ones((n_languages, 1, model_size), jnp.float32)
    beta = jnp.zeros((n_languages, 1, model_size), jnp.float32)
    w1 = (jax.random.normal(ks[0], (n_languages, model_size, bottleneck_size),
                            jnp.float32) / jnp.sqrt(model_size))
    b1 = 0.01 * jax.random.normal(ks[1], (n_languages, 1, bottleneck_size),
                                  jnp.float32)
    w2 = (jax.random.normal(ks[2], (n_languages, bottleneck_size, model_size),
                            jnp.float32) / jnp.sqrt(bottleneck_size))
    b2 = 0.01 * jax.random.normal(ks[3], (n_languages, 1, model_size),
                                  jnp.float32)
    return dict(gamma=gamma, beta=beta, w1=w1, b1=b1, w2=w2, b2=b2)


def reference(x_tbn, lang, params):
    """Pure-JAX reference of the PyTorch forward (eval mode)."""
    idx = int(lang[0])
    g = params["gamma"][idx, 0]
    b = params["beta"][idx, 0]
    w1 = params["w1"][idx]
    b1 = params["b1"][idx, 0]
    w2 = params["w2"][idx]
    b2 = params["b2"][idx, 0]
    x = x_tbn.astype(jnp.float32)
    mean = jnp.mean(x, axis=-1, keepdims=True)
    var = jnp.mean((x - mean) ** 2, axis=-1, keepdims=True)
    xn = (x - mean) * jax.lax.rsqrt(var + LN_EPS)
    h = xn * g + b
    h1 = jnp.maximum(h @ w1 + b1, 0.0)
    ff = h1 @ w2 + b2
    return x + ff


if __name__ == "__main__":
    T, B, model_size, bottleneck_size, n_languages = 8, 2, 32, 16, 2

    key = jax.random.PRNGKey(0)
    kx, kp = jax.random.split(key)
    x = jax.random.normal(kx, (T, B, model_size), jnp.float32)
    lang = jnp.array([1], dtype=jnp.int32)   # select adapter for language 1
    params = init_params(kp, n_languages, model_size, bottleneck_size)

    ref = reference(x, lang, params)

    # f32 run: exact check against the reference.
    out = jax.block_until_ready(multilingual_adapter(x, lang, params))
    assert out.shape == (T, B, model_size)
    assert jnp.allclose(out, ref, atol=1e-4, rtol=1e-4), "f32 mismatch vs reference"

    # bf16 activations + bf16 weights (native MXU path, half the HBM traffic) —
    # the production default for this mem-bound kernel; looser tolerance.
    params_bf16 = dict(params,
                       w1=params["w1"].astype(jnp.bfloat16),
                       w2=params["w2"].astype(jnp.bfloat16))
    out_bf16 = jax.block_until_ready(
        multilingual_adapter(x.astype(jnp.bfloat16), lang, params_bf16))
    assert out_bf16.dtype == jnp.bfloat16
    assert jnp.allclose(out_bf16.astype(jnp.float32), ref,
                        atol=1e-1, rtol=5e-2), "bf16 mismatch vs reference"

    # NOTE: dropout / variational dropout and the stochastic death_rate skip
    # are training-time no-ops here (p=0.0, eval mode), so they are
    # intentionally omitted from the kernel.
    print("KERNEL_OK")
</pallas_src>

<mosaic_0001>
module attributes {stable_mosaic.version = 11 : i64} {
  func.func @_adapter_kernel(%arg0: i32, %arg1: memref<1xi32, #tpu.memory_space<smem>>, %arg2: memref<16x128xf32, #tpu.memory_space<vmem>>, %arg3: memref<1x1x128xf32, #tpu.memory_space<vmem>>, %arg4: memref<1x1x128xf32, #tpu.memory_space<vmem>>, %arg5: memref<1x128x128xf32, #tpu.memory_space<vmem>>, %arg6: memref<1x1x128xf32, #tpu.memory_space<vmem>>, %arg7: memref<1x128x128xf32, #tpu.memory_space<vmem>>, %arg8: memref<1x1x128xf32, #tpu.memory_space<vmem>>, %arg9: memref<16x128xf32, #tpu.memory_space<vmem>>) attributes {dimension_semantics = [#tpu.dimension_semantics<parallel>], iteration_bounds = array<i64: 1>, scalar_prefetch = 1 : i64, scratch_operands = 0 : i64, tpu.core_type = #tpu.core_type<tc>, window_params = [{transform_indices = @transform_0, window_bounds = array<i64: 16, 128>}, {pipeline_mode = #tpu.pipeline_mode<synchronous>, transform_indices = @transform_1, window_bounds = array<i64: 1, 1, 128>}, {pipeline_mode = #tpu.pipeline_mode<synchronous>, transform_indices = @transform_2, window_bounds = array<i64: 1, 1, 128>}, {pipeline_mode = #tpu.pipeline_mode<synchronous>, transform_indices = @transform_3, window_bounds = array<i64: 1, 128, 128>}, {pipeline_mode = #tpu.pipeline_mode<synchronous>, transform_indices = @transform_4, window_bounds = array<i64: 1, 1, 128>}, {pipeline_mode = #tpu.pipeline_mode<synchronous>, transform_indices = @transform_5, window_bounds = array<i64: 1, 128, 128>}, {pipeline_mode = #tpu.pipeline_mode<synchronous>, transform_indices = @transform_6, window_bounds = array<i64: 1, 1, 128>}, {transform_indices = @transform_7, window_bounds = array<i64: 16, 128>}]} {
    %c0 = arith.constant 0 : index
    %c0_0 = arith.constant 0 : index
    %0 = vector.load %arg2[%c0, %c0_0] : memref<16x128xf32, #tpu.memory_space<vmem>>, vector<16x128xf32>
    %1 = tpu.iota {dimensions = array<i32: 1>} : vector<1x128xi32>
    %c32_i32 = arith.constant 32 : i32
    %2 = vector.broadcast %c32_i32 : i32 to vector<1x128xi32>
    %3 = arith.cmpi slt, %1, %2 : vector<1x128xi32>
    %cst = arith.constant dense<0.000000e+00> : vector<16xf32>
    %4 = vector.multi_reduction <add>, %0, %cst [1] : vector<16x128xf32> to vector<16xf32>
    %5 = vector.shape_cast %4 : vector<16xf32> to vector<16x1xf32>
    %cst_1 = arith.constant 3.125000e-02 : f32
    %6 = vector.broadcast %cst_1 : f32 to vector<16x1xf32>
    %7 = arith.mulf %5, %6 : vector<16x1xf32>
    %8 = vector.broadcast %7 : vector<16x1xf32> to vector<16x128xf32>
    %9 = arith.subf %0, %8 : vector<16x128xf32>
    %cst_2 = arith.constant 0.000000e+00 : f32
    %10 = vector.shape_cast %3 : vector<1x128xi1> to vector<1x128xi1>
    %11 = vector.broadcast %10 : vector<1x128xi1> to vector<16x128xi1>
    %12 = vector.broadcast %cst_2 : f32 to vector<16x128xf32>
    %13 = arith.select %11, %9, %12 : vector<16x128xi1>, vector<16x128xf32>
    %14 = arith.mulf %13, %13 : vector<16x128xf32>
    %cst_3 = arith.constant dense<0.000000e+00> : vector<16xf32>
    %15 = vector.multi_reduction <add>, %14, %cst_3 [1] : vector<16x128xf32> to vector<16xf32>
    %16 = vector.shape_cast %15 : vector<16xf32> to vector<16x1xf32>
    %cst_4 = arith.constant 3.125000e-02 : f32
    %17 = vector.broadcast %cst_4 : f32 to vector<16x1xf32>
    %18 = arith.mulf %16, %17 : vector<16x1xf32>
    %cst_5 = arith.constant 9.99999974E-6 : f32
    %19 = vector.broadcast %cst_5 : f32 to vector<16x1xf32>
    %20 = arith.addf %18, %19 : vector<16x1xf32>
    %21 = math.rsqrt %20 : vector<16x1xf32>
    %22 = vector.broadcast %21 : vector<16x1xf32> to vector<16x128xf32>
    %23 = arith.mulf %13, %22 : vector<16x128xf32>
    %c0_6 = arith.constant 0 : index
    %c0_7 = arith.constant 0 : index
    %c0_8 = arith.constant 0 : index
    %24 = vector.load %arg3[%c0_6, %c0_7, %c0_8] : memref<1x1x128xf32, #tpu.memory_space<vmem>>, vector<1x1x128xf32>
    %25 = vector.shape_cast %24 : vector<1x1x128xf32> to vector<1x128xf32>
    %26 = vector.broadcast %25 : vector<1x128xf32> to vector<16x128xf32>
    %27 = arith.mulf %23, %26 : vector<16x128xf32>
    %c0_9 = arith.constant 0 : index
    %c0_10 = arith.constant 0 : index
    %c0_11 = arith.constant 0 : index
    %28 = vector.load %arg4[%c0_9, %c0_10, %c0_11] : memref<1x1x128xf32, #tpu.memory_space<vmem>>, vector<1x1x128xf32>
    %29 = vector.shape_cast %28 : vector<1x1x128xf32> to vector<1x128xf32>
    %30 = vector.broadcast %29 : vector<1x128xf32> to vector<16x128xf32>
    %31 = arith.addf %27, %30 : vector<16x128xf32>
    %c0_12 = arith.constant 0 : index
    %c0_13 = arith.constant 0 : index
    %c0_14 = arith.constant 0 : index
    %32 = vector.load %arg5[%c0_12, %c0_13, %c0_14] : memref<1x128x128xf32, #tpu.memory_space<vmem>>, vector<1x128x128xf32>
    %33 = vector.shape_cast %32 : vector<1x128x128xf32> to vector<128x128xf32>
    %cst_15 = arith.constant dense<0.000000e+00> : vector<16x128xf32>
    %34 = tpu.matmul %31, %33, %cst_15 {dimension_numbers = #tpu.dot_dimension_numbers<[1], [0], [0], [1], [0, 0, 1, 1], [], []>} : vector<16x128xf32>, vector<128x128xf32>, vector<16x128xf32> -> vector<16x128xf32>
    %c0_16 = arith.constant 0 : index
    %c0_17 = arith.constant 0 : index
    %c0_18 = arith.constant 0 : index
    %35 = vector.load %arg6[%c0_16, %c0_17, %c0_18] : memref<1x1x128xf32, #tpu.memory_space<vmem>>, vector<1x1x128xf32>
    %36 = vector.shape_cast %35 : vector<1x1x128xf32> to vector<1x128xf32>
    %37 = vector.broadcast %36 : vector<1x128xf32> to vector<16x128xf32>
    %38 = arith.addf %34, %37 : vector<16x128xf32>
    %cst_19 = arith.constant 0.000000e+00 : f32
    %39 = vector.broadcast %cst_19 : f32 to vector<16x128xf32>
    %40 = arith.maximumf %38, %39 : vector<16x128xf32>
    %c0_20 = arith.constant 0 : index
    %c0_21 = arith.constant 0 : index
    %c0_22 = arith.constant 0 : index
    %41 = vector.load %arg7[%c0_20, %c0_21, %c0_22] : memref<1x128x128xf32, #tpu.memory_space<vmem>>, vector<1x128x128xf32>
    %42 = vector.shape_cast %41 : vector<1x128x128xf32> to vector<128x128xf32>
    %cst_23 = arith.constant dense<0.000000e+00> : vector<16x128xf32>
    %43 = tpu.matmul %40, %42, %cst_23 {dimension_numbers = #tpu.dot_dimension_numbers<[1], [0], [0], [1], [0, 0, 1, 1], [], []>} : vector<16x128xf32>, vector<128x128xf32>, vector<16x128xf32> -> vector<16x128xf32>
    %c0_24 = arith.constant 0 : index
    %c0_25 = arith.constant 0 : index
    %c0_26 = arith.constant 0 : index
    %44 = vector.load %arg8[%c0_24, %c0_25, %c0_26] : memref<1x1x128xf32, #tpu.memory_space<vmem>>, vector<1x1x128xf32>
    %45 = vector.shape_cast %44 : vector<1x1x128xf32> to vector<1x128xf32>
    %46 = vector.broadcast %45 : vector<1x128xf32> to vector<16x128xf32>
    %47 = arith.addf %43, %46 : vector<16x128xf32>
    %48 = arith.addf %0, %47 : vector<16x128xf32>
    %c0_27 = arith.constant 0 : index
    %c0_28 = arith.constant 0 : index
    %49 = vector.load %arg9[%c0_27, %c0_28] : memref<16x128xf32, #tpu.memory_space<vmem>>, vector<16x128xf32>
    tpu.vector_store %arg9[%c0_27, %c0_28], %48 {strides = array<i32>} : memref<16x128xf32, #tpu.memory_space<vmem>>, vector<16x128xf32>,
    return
  }
  func.func @transform_0(%arg0: i32, %arg1: memref<1xi32, #tpu.memory_space<smem>>) -> (i32, i32) {
    %c0_i32 = arith.constant 0 : i32
    %c0_i32_0 = arith.constant 0 : i32
    return %arg0, %c0_i32 : i32, i32
  }
  func.func @transform_1(%arg0: i32, %arg1: memref<1xi32, #tpu.memory_space<smem>>) -> (i32, i32, i32) {
    %c0 = arith.constant 0 : index
    %0 = memref.load %arg1[%c0] : memref<1xi32, #tpu.memory_space<smem>>
    %c0_i32 = arith.constant 0 : i32
    %c0_i32_0 = arith.constant 0 : i32
    %c0_i32_1 = arith.constant 0 : i32
    return %0, %c0_i32, %c0_i32_0 : i32, i32, i32
  }
  func.func @transform_2(%arg0: i32, %arg1: memref<1xi32, #tpu.memory_space<smem>>) -> (i32, i32, i32) {
    %c0 = arith.constant 0 : index
    %0 = memref.load %arg1[%c0] : memref<1xi32, #tpu.memory_space<smem>>
    %c0_i32 = arith.constant 0 : i32
    %c0_i32_0 = arith.constant 0 : i32
    %c0_i32_1 = arith.constant 0 : i32
    return %0, %c0_i32, %c0_i32_0 : i32, i32, i32
  }
  func.func @transform_3(%arg0: i32, %arg1: memref<1xi32, #tpu.memory_space<smem>>) -> (i32, i32, i32) {
    %c0 = arith.constant 0 : index
    %0 = memref.load %arg1[%c0] : memref<1xi32, #tpu.memory_space<smem>>
    %c0_i32 = arith.constant 0 : i32
    %c0_i32_0 = arith.constant 0 : i32
    %c0_i32_1 = arith.constant 0 : i32
    return %0, %c0_i32, %c0_i32_0 : i32, i32, i32
  }
  func.func @transform_4(%arg0: i32, %arg1: memref<1xi32, #tpu.memory_space<smem>>) -> (i32, i32, i32) {
    %c0 = arith.constant 0 : index
    %0 = memref.load %arg1[%c0] : memref<1xi32, #tpu.memory_space<smem>>
    %c0_i32 = arith.constant 0 : i32
    %c0_i32_0 = arith.constant 0 : i32
    %c0_i32_1 = arith.constant 0 : i32
    return %0, %c0_i32, %c0_i32_0 : i32, i32, i32
  }
  func.func @transform_5(%arg0: i32, %arg1: memref<1xi32, #tpu.memory_space<smem>>) -> (i32, i32, i32) {
    %c0 = arith.constant 0 : index
    %0 = memref.load %arg1[%c0] : memref<1xi32, #tpu.memory_space<smem>>
    %c0_i32 = arith.constant 0 : i32
    %c0_i32_0 = arith.constant 0 : i32
    %c0_i32_1 = arith.constant 0 : i32
    return %0, %c0_i32, %c0_i32_0 : i32, i32, i32
  }
  func.func @transform_6(%arg0: i32, %arg1: memref<1xi32, #tpu.memory_space<smem>>) -> (i32, i32, i32) {
    %c0 = arith.constant 0 : index
    %0 = memref.load %arg1[%c0] : memref<1xi32, #tpu.memory_space<smem>>
    %c0_i32 = arith.constant 0 : i32
    %c0_i32_0 = arith.constant 0 : i32
    %c0_i32_1 = arith.constant 0 : i32
    return %0, %c0_i32, %c0_i32_0 : i32, i32, i32
  }
  func.func @transform_7(%arg0: i32, %arg1: memref<1xi32, #tpu.memory_space<smem>>) -> (i32, i32) {
    %c0_i32 = arith.constant 0 : i32
    %c0_i32_0 = arith.constant 0 : i32
    return %arg0, %c0_i32 : i32, i32
  }
}

</mosaic_0001>

<bundles_post_ra>
// kernel: tpu_custom_call.1
= control target key start
LH: loop header
LB: loop body
LE: loop exit
PB: predicated region body
PF: predicated region fallthrough
CT: control target
= control target key end

     0   :  { %14 = vsyncpa [#allocation5], 0  ;;  %s777_s0 = inlined_call_operand.<no memory space> [shape: s32[1], index: 0, kind: input, shape index: {}]   ;;  %s778_s1 = inlined_call_operand.hbm [shape: f32[16,128], index: 1, kind: input, shape index: {}]   ;;  %s779_s2 = inlined_call_operand.vmem [shape: f32[2,1,128], index: 2, kind: input, shape index: {}]   ;;  %s780_s3 = inlined_call_operand.vmem [shape: f32[2,1,128], index: 3, kind: input, shape index: {}]   ;;  %s781_s4 = inlined_call_operand.hbm [shape: f32[2,128,128], index: 4, kind: input, shape index: {}]   ;;  %s782_s5 = inlined_call_operand.vmem [shape: f32[2,1,128], index: 5, kind: input, shape index: {}]   ;;  %s783_s6 = inlined_call_operand.hbm [shape: f32[2,128,128], index: 6, kind: input, shape index: {}]   ;;  %s784_s7 = inlined_call_operand.vmem [shape: f32[2,1,128], index: 7, kind: input, shape index: {}]   ;;  %s785_s8 = inlined_call_operand.hbm [shape: f32[16,128], index: 8, kind: output, shape index: {}]  }
   0x1   :  { %15 = vsyncpa [#allocation8], 0 }
   0x2   :  { %16 = vsyncpa [#allocation6], 0  ;;  %s429_s29 = sshll.u32 %s777_s0, 11  ;;  %s637_s11 = smov [#allocation7]  }
   0x3   :  { %s51_s10 = scalar_lea.hbm %s781_s4, %s429_s29  ;;  %s52_s12 = sshll.u32 %s637_s11, 4  ;;  %s53_s12 = int_to_ptr.vmem [resolvable:$true] %s52_s12 }
   0x4   :  { %s697_s15 = scalar_lea.hbm %s783_s6, %s429_s29  ;;  %s547_s16 = scalar_lea.hbm %s51_s10, 2048 }
   0x5   :  { %p548_p0 = scmp.ne.s32.totalorder %s51_s10, %s547_s16  ;;  %s549_s19 = scalar_lea.hbm %s781_s4, 4096 }
   0x6   :  { %p550_p1 = scmp.lt.s32.totalorder %s51_s10, %s781_s4  ;;  %p551_p2 = scmp.lt.s32.totalorder %s549_s19, %s547_s16 }
   0x8   :  { %p552_p3 = por %p551_p2, %p550_p1 }
   0xa   :  { %p553_p4 = pnand %p552_p3, %p548_p0 }
   0xc   :  { %556 = shalt.err (!%p553_p4)
}
   0xd   :  { %s557_s22 = scalar_lea.vmem %s53_s12, 2048  ;;  %p562_p6 = scmp.lt.s32.totalorder %s53_s12, %s53_s12 }
   0xe   :  { %p558_p5 = scmp.ne.s32.totalorder %s53_s12, %s557_s22  ;;  %p563_p7 = scmp.lt.s32.totalorder %s557_s22, %s557_s22 }
  0x10   :  { %p564_p8 = por %p563_p7, %p562_p6 }
  0x12   :  { %p565_p9 = pnand %p564_p8, %p558_p5 }
  0x14   :  { %568 = shalt.err (!%p565_p9)
}
  0x15   :  { %s638_s23 = smov 128   ;;  %s639_s24 = smov 8  }
  0x16   :  { %58 = dma.hbm_to_vmem [thread:$0]  %s51_s10, 2048, %s53_s12, [#allocation8], %s638_s23, %s638_s23, %s639_s24  }
  0x17   :  { %s640_s25 = smov [#allocation4]   ;;  %s641_s4 = smov [#allocation9]  }
  0x18   :  { %s22_s26 = sshll.u32 %s640_s25, 4  ;;  %s75_s27 = sshll.u32 %s641_s4, 4  ;;  %s23_s26 = int_to_ptr.vmem [resolvable:$true] %s22_s26  ;;  %s76_s27 = int_to_ptr.vmem [resolvable:$true] %s75_s27 }
  0x19   :  { %s577_s28 = scalar_lea.vmem %s23_s26, 256  ;;  %p582_p11 = scmp.lt.s32.totalorder %s23_s26, %s23_s26 }
  0x1a   :  { %p578_p10 = scmp.ne.s32.totalorder %s23_s26, %s577_s28  ;;  %p583_p12 = scmp.lt.s32.totalorder %s577_s28, %s577_s28 }
  0x1c   :  { %p584_p13 = por %p583_p12, %p582_p11 }
  0x1e   :  { %p585_p0 = pnand %p584_p13, %p578_p10 }
  0x20   :  { %588 = shalt.err (!%p585_p0)
}
  0x21   :  { %28 = dma.hbm_to_vmem [thread:$0]  %s778_s1, 256, %s23_s26, [#allocation5], %s638_s23, %s638_s23, %s639_s24  }
  0x22   :  { %s589_s9 = scalar_lea.hbm %s697_s15, 2048  ;;  %s591_s12 = scalar_lea.hbm %s783_s6, 4096 }
  0x23   :  { %p590_p1 = scmp.ne.s32.totalorder %s697_s15, %s589_s9  ;;  %p592_p2 = scmp.lt.s32.totalorder %s697_s15, %s783_s6 }
  0x24   :  { %p593_p3 = scmp.lt.s32.totalorder %s591_s12, %s589_s9 }
  0x26   :  { %p594_p4 = por %p593_p3, %p592_p2 }
  0x28   :  { %p595_p5 = pnand %p594_p4, %p590_p1 }
  0x2a   :  { %598 = shalt.err (!%p595_p5)
}
  0x2b   :  { %s599_s16 = scalar_lea.vmem %s76_s27, 2048  ;;  %p604_p7 = scmp.lt.s32.totalorder %s76_s27, %s76_s27 }
  0x2c   :  { %p600_p6 = scmp.ne.s32.totalorder %s76_s27, %s599_s16  ;;  %p605_p8 = scmp.lt.s32.totalorder %s599_s16, %s599_s16 }
  0x2e   :  { %p606_p9 = por %p605_p8, %p604_p7 }
  0x30   :  { %p607_p10 = pnand %p606_p9, %p600_p6 }
  0x32   :  { %610 = shalt.err (!%p607_p10)
}
  0x33   :  { %81 = dma.hbm_to_vmem [thread:$0]  %s697_s15, 2048, %s76_s27, [#allocation8], %s638_s23, %s638_s23, %s639_s24  }
  0x34   :  { %631 = dma.done.wait [#allocation5], 256  }
  0x35   :  { %632 = vsyncadd [#allocation5], 4294967040 }
  0x36   :  { %633 = dma.done.wait [#allocation8], 4096  }
  0x37   :  { %634 = vsyncadd [#allocation8], 4294963200  ;;  %v727_v0 = vld [vmem:[#allocation4] sm:$0xff]  ;;  %v730_v1 = vld [vmem:[#allocation4 + $0x8] sm:$0xff]  ;;  %v138_v4 = vlaneseq  ;;  %p115_p11 = scmp.lt.s32.totalorder %s777_s0, 1  ;;  %s642_s29 = smov [#allocation10]  }
  0x38   :  { %141 = vadd.xlane.f32.xlu0 %v727_v0  ;;  %v200_v2 = vld [vmem:[#allocation7 + $0x78] sm:$0xff]  ;;  %v199_v3 = vld [vmem:[#allocation7 + $0x70] sm:$0xff]  ;;  %v198_v16 = vld [vmem:[#allocation7 + $0x68] sm:$0xff]  ;;  %s392_s30 = sshll.u32 %s642_s29, 4  ;;  %s393_s30 = int_to_ptr.vmem [resolvable:$true] %s392_s30 }
  0x39   :  { %467 = vmatprep.subr.mxu0 %v200_v2  ;;  %v139_v5 = vand.u32 127, %v138_v4  ;;  %v197_v17 = vld [vmem:[#allocation7 + $0x60] sm:$0xff]  ;;  %v196_v18 = vld [vmem:[#allocation7 + $0x58] sm:$0xff]  ;;  %v195_v19 = vld [vmem:[#allocation7 + $0x50] sm:$0xff]  ;;  %s787_s0 = smov (!%p115_p11, %s777_s0), 1  ;;  %p616_p13 = scmp.lt.s32.totalorder %s393_s30, %s393_s30 }
  0x3a   :  { %468 = vmatpush3.msra.mxu0 %v200_v2  ;;  %v194_v20 = vld [vmem:[#allocation7 + $0x48] sm:$0xff]  ;;  %v193_v21 = vld [vmem:[#allocation7 + $0x40] sm:$0xff]  ;;  %v192_v22 = vld [vmem:[#allocation7 + $0x38] sm:$0xff]  ;;  %s117_s20 = scalar_lea.vmem %s779_s2, %s787_s0  ;;  %s122_s25 = scalar_lea.vmem %s780_s3, %s787_s0 }
  0x3b   :  { %469 = vmatprep.subr.mxu0 %v199_v3  ;;  %vm140_vm0 = vcmp.lt.s32.totalorder %v139_v5, 32  ;;  %v191_v23 = vld [vmem:[#allocation7 + $0x30] sm:$0xff]  ;;  %v190_v24 = vld [vmem:[#allocation7 + $0x28] sm:$0xff]  ;;  %v189_v25 = vld [vmem:[#allocation7 + $0x20] sm:$0xff]  ;;  %s128_s26 = scalar_lea.vmem %s782_s5, %s787_s0  ;;  %s134_s28 = scalar_lea.vmem %s784_s7, %s787_s0 }
  0x3c   :  { %143 = vadd.xlane.f32.xlu0 %v730_v1  ;;  %470 = vmatpush3.msra.mxu0 %v199_v3  ;;  %v188_v26 = vld [vmem:[#allocation7 + $0x18] sm:$0xff]  ;;  %v187_v27 = vld [vmem:[#allocation7 + $0x10] sm:$0xff]  ;;  %v186_v28 = vld [vmem:[#allocation7 + $0x8] sm:$0xff]  ;;  %s611_s5 = scalar_lea.vmem %s393_s30, 256 }
  0x3d   :  { %471 = vmatprep.subr.mxu0 %v198_v16  ;;  %v185_v29 = vld [vmem:[#allocation7] sm:$0xff]  ;;  %v300_v30 = vld [vmem:[#allocation9 + $0x78] sm:$0xff]  ;;  %v299_v31 = vld [vmem:[#allocation9 + $0x70] sm:$0xff]  ;;  %p612_p12 = scmp.ne.s32.totalorder %s393_s30, %s611_s5  ;;  %p617_p0 = scmp.lt.s32.totalorder %s611_s5, %s611_s5 }
  0x3e   :  { %472 = vmatpush3.msra.mxu0 %v198_v16  ;;  %502 = vmatprep.subr.mxu1 %v300_v30  ;;  %v298_v32 = vld [vmem:[#allocation9 + $0x68] sm:$0xff]  ;;  %v297_v33 = vld [vmem:[#allocation9 + $0x60] sm:$0xff]  ;;  %v296_v34 = vld [vmem:[#allocation9 + $0x58] sm:$0xff] }
  0x3f   :  { %473 = vmatprep.subr.mxu0 %v197_v17  ;;  %503 = vmatpush3.msra.mxu1 %v300_v30  ;;  %v295_v35 = vld [vmem:[#allocation9 + $0x50] sm:$0xff]  ;;  %v294_v36 = vld [vmem:[#allocation9 + $0x48] sm:$0xff]  ;;  %v293_v37 = vld [vmem:[#allocation9 + $0x40] sm:$0xff]  ;;  %p618_p1 = por %p617_p0, %p616_p13 }
  0x40   :  { %474 = vmatpush3.msra.mxu0 %v197_v17  ;;  %504 = vmatprep.subr.mxu1 %v299_v31  ;;  %v292_v38 = vld [vmem:[#allocation9 + $0x38] sm:$0xff]  ;;  %v291_v39 = vld [vmem:[#allocation9 + $0x30] sm:$0xff]  ;;  %v290_v40 = vld [vmem:[#allocation9 + $0x28] sm:$0xff] }
  0x41   :  { %475 = vmatprep.subr.mxu0 %v196_v18  ;;  %505 = vmatpush3.msra.mxu1 %v299_v31  ;;  %v289_v41 = vld [vmem:[#allocation9 + $0x20] sm:$0xff]  ;;  %v425_v49 = vld [vmem:[%s117_s20] ss:$0 sm:$0xff]  ;;  %v288_v58 = vld [vmem:[#allocation9 + $0x18] sm:$0xff]  ;;  %p619_p2 = pnand %p618_p1, %p612_p12 }
  0x42   :  { %476 = vmatpush3.msra.mxu0 %v196_v18  ;;  %506 = vmatprep.subr.mxu1 %v298_v32  ;;  %v426_v51 = vld [vmem:[%s122_s25] ss:$0 sm:$0xff]  ;;  %v286_v60 = vld [vmem:[#allocation9 + $0x8] sm:$0xff]  ;;  %v285_v61 = vld [vmem:[#allocation9] sm:$0xff] }
  0x43   :  { %477 = vmatprep.subr.mxu0 %v195_v19  ;;  %507 = vmatpush3.msra.mxu1 %v298_v32  ;;  %v287_v59 = vld [vmem:[#allocation9 + $0x10] sm:$0xff] }
  0x44   :  { %478 = vmatpush3.msra.mxu0 %v195_v19  ;;  %508 = vmatprep.subr.mxu1 %v297_v33  ;;  %v427_v62 = vld [vmem:[%s128_s26] ss:$0 sm:$0xff] }
  0x45   :  { %479 = vmatprep.subr.mxu0 %v194_v20  ;;  %509 = vmatpush3.msra.mxu1 %v297_v33 }
  0x46   :  { %480 = vmatpush3.msra.mxu0 %v194_v20  ;;  %510 = vmatprep.subr.mxu1 %v296_v34 }
  0x47   :  { %481 = vmatprep.subr.mxu0 %v193_v21  ;;  %511 = vmatpush3.msra.mxu1 %v296_v34 }
  0x48   :  { %482 = vmatpush3.msra.mxu0 %v193_v21  ;;  %512 = vmatprep.subr.mxu1 %v295_v35 }
  0x49   :  { %483 = vmatprep.subr.mxu0 %v192_v22  ;;  %513 = vmatpush3.msra.mxu1 %v295_v35 }
  0x4a   :  { %484 = vmatpush3.msra.mxu0 %v192_v22  ;;  %514 = vmatprep.subr.mxu1 %v294_v36 }
  0x4b   :  { %485 = vmatprep.subr.mxu0 %v191_v23  ;;  %515 = vmatpush3.msra.mxu1 %v294_v36 }
  0x4c   :  { %486 = vmatpush3.msra.mxu0 %v191_v23  ;;  %516 = vmatprep.subr.mxu1 %v293_v37 }
  0x4d   :  { %487 = vmatprep.subr.mxu0 %v190_v24  ;;  %517 = vmatpush3.msra.mxu1 %v293_v37 }
  0x4e   :  { %488 = vmatpush3.msra.mxu0 %v190_v24  ;;  %518 = vmatprep.subr.mxu1 %v292_v38 }
  0x4f   :  { %489 = vmatprep.subr.mxu0 %v189_v25  ;;  %519 = vmatpush3.msra.mxu1 %v292_v38 }
  0x50   :  { %490 = vmatpush3.msra.mxu0 %v189_v25  ;;  %520 = vmatprep.subr.mxu1 %v291_v39 }
  0x51   :  { %491 = vmatprep.subr.mxu0 %v188_v26  ;;  %521 = vmatpush3.msra.mxu1 %v291_v39 }
  0x52   :  { %492 = vmatpush3.msra.mxu0 %v188_v26  ;;  %522 = vmatprep.subr.mxu1 %v290_v40 }
  0x53   :  { %493 = vmatprep.subr.mxu0 %v187_v27  ;;  %523 = vmatpush3.msra.mxu1 %v290_v40 }
  0x54   :  { %494 = vmatpush3.msra.mxu0 %v187_v27  ;;  %524 = vmatprep.subr.mxu1 %v289_v41 }
  0x55   :  { %495 = vmatprep.subr.mxu0 %v186_v28  ;;  %525 = vmatpush3.msra.mxu1 %v289_v41 }
  0x56   :  { %496 = vmatpush3.msra.mxu0 %v186_v28  ;;  %526 = vmatprep.subr.mxu1 %v288_v58 }
  0x57   :  { %497 = vmatprep.subr.mxu0 %v185_v29  ;;  %527 = vmatpush3.msra.mxu1 %v288_v58 }
  0x58   :  { %498 = vmatpush3.msra.mxu0 %v185_v29  ;;  %528 = vmatprep.subr.mxu1 %v287_v59 }
  0x59   :  { %529 = vmatpush3.msra.mxu1 %v287_v59 }
  0x5a   :  { %530 = vmatprep.subr.mxu1 %v286_v60 }
  0x5b   :  { %531 = vmatpush3.msra.mxu1 %v286_v60 }
  0x5c   :  { %532 = vmatprep.subr.mxu1 %v285_v61 }
  0x5d   :  { %533 = vmatpush3.msra.mxu1 %v285_v61 }
  0xc1   :  { %v142_v6 = vpop.xlane.xlu0 %141 }
  0xc2   :  { %v145_v7 = vmul.f32 0.03125, %v142_v6 }
  0xc4   :  { %v147_v8 = vsub.f32 %v727_v0, %v145_v7  ;;  %v428_v7 = vld [vmem:[%s134_s28] ss:$0 sm:$0xff] }
  0xc5   :  { %v144_v9 = vpop.xlane.xlu0 %143 }
  0xc6   :  { %v146_v10 = vmul.f32 0.03125, %v144_v9  ;;  %v734_v11 = vsel %vm140_vm0, %v147_v8, 0.0 }
  0xc7   :  { %v153_v12 = vmul.f32 %v734_v11, %v734_v11 }
  0xc8   :  { %v148_v13 = vsub.f32 %v730_v1, %v146_v10 }
  0xc9   :  { %155 = vadd.xlane.f32.xlu1 %v153_v12 }
  0xca   :  { %v739_v14 = vsel %vm140_vm0, %v148_v13, 0.0 }
  0xcb   :  { %v154_v15 = vmul.f32 %v739_v14, %v739_v14 }
  0xcd   :  { %157 = vadd.xlane.f32.xlu1 %v154_v15 }
 0x152   :  { %v156_v42 = vpop.xlane.xlu1 %155 }
 0x153   :  { %v159_v43 = vmul.f32 0.03125, %v156_v42 }
 0x155   :  { %v161_v44 = vadd.f32 1e-05, %v159_v43 }
 0x156   :  { %v158_v45 = vpop.xlane.xlu1 %157 }
 0x157   :  { %543 = vrsqrt.f32 %v161_v44  ;;  %v160_v46 = vmul.f32 0.03125, %v158_v45 }
 0x159   :  { %v162_v47 = vadd.f32 1e-05, %v160_v46 }
 0x15b   :  { %545 = vrsqrt.f32 %v162_v47 }
 0x164   :  { %v544_v48 = vpop.eup %543 }
 0x165   :  { %v165_v50 = vmul.f32 %v544_v48, %v734_v11 }
 0x167   :  { %v174_v52 = vmul.f32 %v425_v49, %v165_v50 }
 0x168   :  { %v546_v53 = vpop.eup %545 }
 0x169   :  { %v166_v54 = vmul.f32 %v546_v53, %v739_v14  ;;  %v183_v55 = vadd.f32 %v426_v51, %v174_v52 }
 0x16b   :  { %v175_v56 = vmul.f32 %v425_v49, %v166_v54  ;;  %499 = vmatprep.mubr.f32.mxu0 %v183_v55 }
 0x16d   :  { %v184_v57 = vadd.f32 %v426_v51, %v175_v56 }
 0x16f   :  { %500 = vmatmul.mubr.f32.vlgmr.msra.gmra.mxu0 %v184_v57 }
 0x22f   :  { %v501_v63 = vpop.f32.mrf.mxu0 }
 0x230   :  { %v280_v2 = vadd.f32 %v501_v63, %v427_v62 }
 0x231   :  { %v274_v3 = vpop.f32.mrf.mxu0 }
 0x232   :  { %v275_v4 = vadd.f32 %v427_v62, %v274_v3  ;;  %v284_v6 = vmax.f32 %v280_v2, 0.0 }
 0x234   :  { %v283_v5 = vmax.f32 %v275_v4, 0.0 }
 0x236   :  { %534 = vmatprep.mubr.f32.mxu1 %v283_v5 }
 0x237   :  { %535 = vmatmul.mubr.f32.vlgmr.msra.gmra.mxu1 %v284_v6 }
 0x2f7   :  { %v536_v8 = vpop.f32.mrf.mxu1 }
 0x2f8   :  { %v380_v9 = vadd.f32 %v536_v8, %v428_v7 }
 0x2f9   :  { %v374_v10 = vpop.f32.mrf.mxu1 }
 0x2fa   :  { %v384_v11 = vadd.f32 %v380_v9, %v730_v1  ;;  %v375_v12 = vadd.f32 %v428_v7, %v374_v10 }
 0x2fc   :  { %386 = vst [vmem:[#allocation10 + $0x8] sm:$0xff] %v384_v11  ;;  %v383_v13 = vadd.f32 %v375_v12, %v727_v0 }
 0x2fe   :  { %385 = vst [vmem:[#allocation10] sm:$0xff] %v383_v13 }
 0x2ff   :  { %622 = shalt.err (!%p619_p2)
}
 0x300   :  { %398 = dma.vmem_to_hbm [thread:$0]  %s393_s30, 256, %s785_s8, [#allocation6], %s638_s23, %s638_s23, %s639_s24  }
 0x301   :  { %635 = dma.done.wait [#allocation6], 256  }
 0x302   :  { %636 = vsyncadd [#allocation6], 4294967040 }
 0x303   :  { %402 = vsyncpa [#allocation5], 1 }
 0x304   :  { %403 = vsyncpa [#allocation8], 1 }
 0x305   :  { %404 = vsyncpa [#allocation6], 1 }

</bundles_post_ra>
